<compile_context>
chip_gen: v6e
topology: v6e:2x2x1
jax: 0.10.0
libtpu: 0.0.40
codegen_flags: <defaults>
</compile_context>

<pallas_src>
import jax
import jax.numpy as jnp
from jax import lax
from jax.experimental import pallas as pl
from jax.experimental.pallas import tpu as pltpu


def _round_up(n, m):
    return ((n + m - 1) // m) * m


def _pad_to(x, shape):
    return jnp.pad(x, [(0, t - s) for s, t in zip(x.shape, shape)])


def textrnn_recurrence_kernel(xproj_ref,      # (S, TB, Hp) bf16: x@W1x + b1
                              wcat1_ref,      # (Hp, 2Hp) bf16: [U1@W1h | U1@W2x]
                              u2w2h_ref,      # (Hp, Hp)  bf16: U2@W2h
                              u2wfc_ref,      # (Hp, Cp)  bf16: U2@Wfc
                              k1_ref,         # (1, Hp) f32: c1@W1h
                              k20_ref,        # (1, Hp) f32: c1@W2x + b2
                              k2_ref,         # (1, Hp) f32: c1@W2x + b2 + c2@W2h
                              kfc_ref,        # (1, Cp) f32: c2@Wfc + bfc
                              out_ref):       # (TB, Cp) f32 logits
    S, TB, Hp = xproj_ref.shape

    # Hoisted bias broadcasts (JAX does not CSE broadcast_in_dim).
    k1b = jnp.broadcast_to(k1_ref[...], (TB, Hp))
    k20b = jnp.broadcast_to(k20_ref[...], (TB, Hp))
    k2b = jnp.broadcast_to(k2_ref[...], (TB, Hp))

    # Only two small bf16 weights live across the loop (no spill pressure).
    wcat1 = wcat1_ref[...]
    u2w2h = u2w2h_ref[...]

    def a1_project(a1):
        # One 256-lane-wide matmul: [a1@U1W1H | a1@U1W2X], f32 accumulation.
        return jnp.dot(a1.astype(jnp.bfloat16), wcat1,
                       preferred_element_type=jnp.float32)

    # ---- peeled step t = 0 (zero initial hidden states) --------------------
    a1 = jnp.tanh(xproj_ref[0].astype(jnp.float32))
    r1 = a1_project(a1)                               # (TB, 2Hp)
    a2 = jnp.tanh(r1[:, Hp:] + k20b)

    # ---- steps t = 1 .. S-1 -------------------------------------------------
    def step(t, carry):
        r1, a2 = carry
        a1 = jnp.tanh(xproj_ref[t].astype(jnp.float32) + r1[:, :Hp] + k1b)
        r1n = a1_project(a1)
        a2n = jnp.tanh(r1n[:, Hp:]
                       + jnp.dot(a2.astype(jnp.bfloat16), u2w2h,
                                 preferred_element_type=jnp.float32)
                       + k2b)
        return (r1n, a2n)

    # Full unroll for short sequences; partial unroll keeps LLO visibility
    # without blowing instruction memory at large S.
    unroll = True if S <= 64 else 8
    _, a2 = lax.fori_loop(1, S, step, (r1, a2), unroll=unroll)

    # Dropout is identity at inference; folded classifier (lane-dense output).
    out_ref[...] = (jnp.dot(a2.astype(jnp.bfloat16), u2wfc_ref[...],
                            preferred_element_type=jnp.float32)
                    + jnp.broadcast_to(kfc_ref[...], out_ref.shape))


def textrnn_forward(tokens, params):
    """tokens: (B, S) int32 ids. Returns (B, num_classes) float32 logits."""
    # Embedding gather + input projection (fully parallel) stay in XLA glue.
    emb = jnp.take(params["embedding"], tokens, axis=0)       # (B, S, E)
    x = jnp.transpose(emb, (1, 0, 2)).astype(jnp.float32)     # (S, B, E)

    B, S = tokens.shape
    H = params["w1h"].shape[0]
    C = params["b_fc"].shape[-1]

    Bp = _round_up(B, 8)          # sublane tile
    Hp = _round_up(H, 128)        # lane tile
    Cp = _round_up(C, 128)

    # Hoisted input projection (one big parallel matmul, outside the kernel).
    xproj = jnp.einsum("sbe,eh->sbh", x, params["w1x"]) + params["b1"]   # (S,B,H)
    xproj = _pad_to(xproj, (S, Bp, Hp)).astype(jnp.bfloat16)

    # ---- algebraic folds (computed once, in f32) ----------------------------
    u1, c1 = params["u1"], params["c1"]
    u2, c2 = params["u2"], params["c2"]
    u1w1h = u1 @ params["w1h"]                       # (H, H)
    u1w2x = u1 @ params["w2x"]                       # (H, H)
    u2w2h = u2 @ params["w2h"]                       # (H, H)
    u2wfc = u2 @ params["w_fc"]                      # (H, C)
    k1 = c1 @ params["w1h"]                          # (1, H)
    k20 = c1 @ params["w2x"] + params["b2"]          # (1, H)   (step 0: no c2@W2h)
    k2 = k20 + c2 @ params["w2h"]                    # (1, H)
    kfc = c2 @ params["w_fc"] + params["b_fc"]       # (1, C)

    wcat1 = jnp.concatenate([_pad_to(u1w1h, (Hp, Hp)),
                             _pad_to(u1w2x, (Hp, Hp))],
                            axis=1).astype(jnp.bfloat16)       # (Hp, 2Hp)
    u2w2h_p = _pad_to(u2w2h, (Hp, Hp)).astype(jnp.bfloat16)
    u2wfc_p = _pad_to(u2wfc, (Hp, Cp)).astype(jnp.bfloat16)
    k1_p = _pad_to(k1, (1, Hp)).astype(jnp.float32)
    k20_p = _pad_to(k20, (1, Hp)).astype(jnp.float32)
    k2_p = _pad_to(k2, (1, Hp)).astype(jnp.float32)
    kfc_p = _pad_to(kfc, (1, Cp)).astype(jnp.float32)

    # Batch grid axis (8-row blocks); marked "parallel" so v7x's two
    # TensorCores can each take a share of the batch. Weights/biases use
    # constant index_maps -> DMA'd once, resident across grid steps.
    TB = 8
    grid = (Bp // TB,)
    const = lambda b: (0, 0)

    # TODO(synk): for very long sequences, additionally chunk S (stream xproj
    # blocks over an "arbitrary" grid axis with a1/a2 carried in VMEM scratch)
    # so xproj never has to be fully resident on v7x's 64 MiB VMEM.
    # TODO(synk): on v5e, the three loop-resident RHS weights could be parked
    # in the MXU via pltpu.matmul_push_rhs/_acc_lhs/_pop to avoid re-pushing a
    # 128x128 RHS every step for an 8-row LHS.
    out_padded = pl.pallas_call(
        textrnn_recurrence_kernel,
        out_shape=jax.ShapeDtypeStruct((Bp, Cp), jnp.float32),
        grid_spec=pltpu.PrefetchScalarGridSpec(
            num_scalar_prefetch=0,
            grid=grid,
            in_specs=[
                pl.BlockSpec((S, TB, Hp), lambda b: (0, b, 0)),   # xproj
                pl.BlockSpec((Hp, 2 * Hp), const),                # [U1W1H|U1W2X]
                pl.BlockSpec((Hp, Hp), const),                    # U2W2H
                pl.BlockSpec((Hp, Cp), const),                    # U2Wfc
                pl.BlockSpec((1, Hp), const),                     # k1
                pl.BlockSpec((1, Hp), const),                     # k20
                pl.BlockSpec((1, Hp), const),                     # k2
                pl.BlockSpec((1, Cp), const),                     # kfc
            ],
            out_specs=pl.BlockSpec((TB, Cp), lambda b: (b, 0)),
        ),
        compiler_params=pltpu.CompilerParams(
            dimension_semantics=("parallel",),
            vmem_limit_bytes=32 * 1024 * 1024,
        ),
    )(xproj, wcat1, u2w2h_p, u2wfc_p, k1_p, k20_p, k2_p, kfc_p)

    return out_padded[:B, :C]


def init_params(key, vocab_size, embedding_dim, hidden_dim, num_classes):
    """Deterministic synthetic parameters, PyTorch-Linear-style uniform init."""
    ks = jax.random.split(key, 13)

    def lin(k, fan_in, shape):
        bound = 1.0 / jnp.sqrt(jnp.float32(fan_in))
        return jax.random.uniform(k, shape, jnp.float32, -bound, bound)

    E, H, C = embedding_dim, hidden_dim, num_classes
    return {
        "embedding": jax.random.normal(ks[0], (vocab_size, E), jnp.float32),
        # rnn1.i2h: Linear(E + H, H) split into x-part and h-part
        "w1x": lin(ks[1], E + H, (E, H)),
        "w1h": lin(ks[2], E + H, (H, H)),
        "b1":  lin(ks[3], E + H, (1, H)),
        # rnn1.h2o: Linear(H, H)
        "u1":  lin(ks[4], H, (H, H)),
        "c1":  lin(ks[5], H, (1, H)),
        # rnn2.i2h: Linear(H + H, H) split
        "w2x": lin(ks[6], H + H, (H, H)),
        "w2h": lin(ks[7], H + H, (H, H)),
        "b2":  lin(ks[8], H + H, (1, H)),
        # rnn2.h2o: Linear(H, H)
        "u2":  lin(ks[9], H, (H, H)),
        "c2":  lin(ks[10], H, (1, H)),
        # fc: Linear(H, C)
        "w_fc": lin(ks[11], H, (H, C)),
        "b_fc": lin(ks[12], H, (1, C)),
    }


def textrnn_reference(tokens, params):
    """Pure-JAX f32 reference of the exact PyTorch forward (eval mode)."""
    emb = jnp.take(params["embedding"], tokens, axis=0)  # (B, S, E)
    B, S, _ = emb.shape
    H = params["w1h"].shape[0]
    h1 = jnp.zeros((B, H), jnp.float32)
    h2 = jnp.zeros((B, H), jnp.float32)
    for t in range(S):
        xt = emb[:, t, :]
        a1 = jnp.tanh(xt @ params["w1x"] + h1 @ params["w1h"] + params["b1"])
        h1 = a1 @ params["u1"] + params["c1"]
        a2 = jnp.tanh(h1 @ params["w2x"] + h2 @ params["w2h"] + params["b2"])
        h2 = a2 @ params["u2"] + params["c2"]
    return h2 @ params["w_fc"] + params["b_fc"]


if __name__ == "__main__":
    # small, module-consistent shapes
    vocab_size = 100
    embedding_dim = 16
    hidden_dim = 32
    num_classes = 4
    batch = 2
    seq_len = 8

    key = jax.random.PRNGKey(0)
    pkey, tkey = jax.random.split(key)
    params = init_params(pkey, vocab_size, embedding_dim, hidden_dim, num_classes)
    tokens = jax.random.randint(tkey, (batch, seq_len), 0, vocab_size, dtype=jnp.int32)

    out = textrnn_forward(tokens, params)
    out = jax.block_until_ready(out)

    ref = textrnn_reference(tokens, params)
    assert out.shape == (batch, num_classes)
    # bf16 MXU operands (f32 accumulation) -> relaxed but still tight tolerance.
    assert jnp.allclose(out, ref, atol=2e-2, rtol=2e-2), "mismatch vs pure-JAX reference"

    print("KERNEL_OK")
</pallas_src>

<mosaic_0001>
module attributes {stable_mosaic.version = 11 : i64} {
  func.func @textrnn_recurrence_kernel(%arg0: i32, %arg1: memref<8x8x128xbf16, #tpu.memory_space<vmem>>, %arg2: memref<128x256xbf16, #tpu.memory_space<vmem>>, %arg3: memref<128x128xbf16, #tpu.memory_space<vmem>>, %arg4: memref<128x128xbf16, #tpu.memory_space<vmem>>, %arg5: memref<1x128xf32, #tpu.memory_space<vmem>>, %arg6: memref<1x128xf32, #tpu.memory_space<vmem>>, %arg7: memref<1x128xf32, #tpu.memory_space<vmem>>, %arg8: memref<1x128xf32, #tpu.memory_space<vmem>>, %arg9: memref<8x128xf32, #tpu.memory_space<vmem>>) attributes {dimension_semantics = [#tpu.dimension_semantics<parallel>], iteration_bounds = array<i64: 1>, scalar_prefetch = 0 : i64, scratch_operands = 0 : i64, tpu.core_type = #tpu.core_type<tc>, window_params = [{transform_indices = @transform_0, window_bounds = array<i64: 8, 8, 128>}, {pipeline_mode = #tpu.pipeline_mode<synchronous>, transform_indices = @transform_1, window_bounds = array<i64: 128, 256>}, {pipeline_mode = #tpu.pipeline_mode<synchronous>, transform_indices = @transform_2, window_bounds = array<i64: 128, 128>}, {pipeline_mode = #tpu.pipeline_mode<synchronous>, transform_indices = @transform_3, window_bounds = array<i64: 128, 128>}, {pipeline_mode = #tpu.pipeline_mode<synchronous>, transform_indices = @transform_4, window_bounds = array<i64: 1, 128>}, {pipeline_mode = #tpu.pipeline_mode<synchronous>, transform_indices = @transform_5, window_bounds = array<i64: 1, 128>}, {pipeline_mode = #tpu.pipeline_mode<synchronous>, transform_indices = @transform_6, window_bounds = array<i64: 1, 128>}, {pipeline_mode = #tpu.pipeline_mode<synchronous>, transform_indices = @transform_7, window_bounds = array<i64: 1, 128>}, {transform_indices = @transform_8, window_bounds = array<i64: 8, 128>}]} {
    %c0 = arith.constant 0 : index
    %c0_0 = arith.constant 0 : index
    %0 = vector.load %arg5[%c0, %c0_0] : memref<1x128xf32, #tpu.memory_space<vmem>>, vector<1x128xf32>
    %1 = vector.shape_cast %0 : vector<1x128xf32> to vector<1x128xf32>
    %2 = vector.broadcast %1 : vector<1x128xf32> to vector<8x128xf32>
    %c0_1 = arith.constant 0 : index
    %c0_2 = arith.constant 0 : index
    %3 = vector.load %arg6[%c0_1, %c0_2] : memref<1x128xf32, #tpu.memory_space<vmem>>, vector<1x128xf32>
    %4 = vector.shape_cast %3 : vector<1x128xf32> to vector<1x128xf32>
    %5 = vector.broadcast %4 : vector<1x128xf32> to vector<8x128xf32>
    %c0_3 = arith.constant 0 : index
    %c0_4 = arith.constant 0 : index
    %6 = vector.load %arg7[%c0_3, %c0_4] : memref<1x128xf32, #tpu.memory_space<vmem>>, vector<1x128xf32>
    %7 = vector.shape_cast %6 : vector<1x128xf32> to vector<1x128xf32>
    %8 = vector.broadcast %7 : vector<1x128xf32> to vector<8x128xf32>
    %c0_5 = arith.constant 0 : index
    %c0_6 = arith.constant 0 : index
    %9 = vector.load %arg2[%c0_5, %c0_6] : memref<128x256xbf16, #tpu.memory_space<vmem>>, vector<128x256xbf16>
    %c0_7 = arith.constant 0 : index
    %c0_8 = arith.constant 0 : index
    %10 = vector.load %arg3[%c0_7, %c0_8] : memref<128x128xbf16, #tpu.memory_space<vmem>>, vector<128x128xbf16>
    %c0_9 = arith.constant 0 : index
    %c0_10 = arith.constant 0 : index
    %c0_11 = arith.constant 0 : index
    %11 = vector.load %arg1[%c0_9, %c0_10, %c0_11] : memref<8x8x128xbf16, #tpu.memory_space<vmem>>, vector<1x8x128xbf16>
    %12 = vector.shape_cast %11 : vector<1x8x128xbf16> to vector<8x128xbf16>
    %13 = arith.extf %12 : vector<8x128xbf16> to vector<8x128xf32>
    %14 = math.tanh %13 : vector<8x128xf32>
    %15 = arith.truncf %14 : vector<8x128xf32> to vector<8x128xbf16>
    %cst = arith.constant dense<0.000000e+00> : vector<8x256xf32>
    %16 = tpu.matmul %15, %9, %cst {dimension_numbers = #tpu.dot_dimension_numbers<[1], [0], [0], [1], [0, 0, 1, 1], [], []>} : vector<8x128xbf16>, vector<128x256xbf16>, vector<8x256xf32> -> vector<8x256xf32>
    %17 = vector.extract_strided_slice %16 {offsets = [0, 128], sizes = [8, 128], strides = [1, 1]} : vector<8x256xf32> to vector<8x128xf32>
    %18 = arith.addf %17, %5 : vector<8x128xf32>
    %19 = math.tanh %18 : vector<8x128xf32>
    %c1_i32 = arith.constant 1 : i32
    %20 = arith.index_cast %c1_i32 : i32 to index
    %c0_12 = arith.constant 0 : index
    %c0_13 = arith.constant 0 : index
    %21 = vector.load %arg1[%20, %c0_12, %c0_13] : memref<8x8x128xbf16, #tpu.memory_space<vmem>>, vector<1x8x128xbf16>
    %22 = vector.shape_cast %21 : vector<1x8x128xbf16> to vector<8x128xbf16>
    %23 = arith.extf %22 : vector<8x128xbf16> to vector<8x128xf32>
    %24 = vector.extract_strided_slice %16 {offsets = [0, 0], sizes = [8, 128], strides = [1, 1]} : vector<8x256xf32> to vector<8x128xf32>
    %25 = arith.addf %23, %24 : vector<8x128xf32>
    %26 = arith.addf %25, %2 : vector<8x128xf32>
    %27 = math.tanh %26 : vector<8x128xf32>
    %28 = arith.truncf %27 : vector<8x128xf32> to vector<8x128xbf16>
    %cst_14 = arith.constant dense<0.000000e+00> : vector<8x256xf32>
    %29 = tpu.matmul %28, %9, %cst_14 {dimension_numbers = #tpu.dot_dimension_numbers<[1], [0], [0], [1], [0, 0, 1, 1], [], []>} : vector<8x128xbf16>, vector<128x256xbf16>, vector<8x256xf32> -> vector<8x256xf32>
    %30 = vector.extract_strided_slice %29 {offsets = [0, 128], sizes = [8, 128], strides = [1, 1]} : vector<8x256xf32> to vector<8x128xf32>
    %31 = arith.truncf %19 : vector<8x128xf32> to vector<8x128xbf16>
    %cst_15 = arith.constant dense<0.000000e+00> : vector<8x128xf32>
    %32 = tpu.matmul %31, %10, %cst_15 {dimension_numbers = #tpu.dot_dimension_numbers<[1], [0], [0], [1], [0, 0, 1, 1], [], []>} : vector<8x128xbf16>, vector<128x128xbf16>, vector<8x128xf32> -> vector<8x128xf32>
    %33 = arith.addf %30, %32 : vector<8x128xf32>
    %34 = arith.addf %33, %8 : vector<8x128xf32>
    %35 = math.tanh %34 : vector<8x128xf32>
    %c2_i32 = arith.constant 2 : i32
    %36 = arith.index_cast %c2_i32 : i32 to index
    %c0_16 = arith.constant 0 : index
    %c0_17 = arith.constant 0 : index
    %37 = vector.load %arg1[%36, %c0_16, %c0_17] : memref<8x8x128xbf16, #tpu.memory_space<vmem>>, vector<1x8x128xbf16>
    %38 = vector.shape_cast %37 : vector<1x8x128xbf16> to vector<8x128xbf16>
    %39 = arith.extf %38 : vector<8x128xbf16> to vector<8x128xf32>
    %40 = vector.extract_strided_slice %29 {offsets = [0, 0], sizes = [8, 128], strides = [1, 1]} : vector<8x256xf32> to vector<8x128xf32>
    %41 = arith.addf %39, %40 : vector<8x128xf32>
    %42 = arith.addf %41, %2 : vector<8x128xf32>
    %43 = math.tanh %42 : vector<8x128xf32>
    %44 = arith.truncf %43 : vector<8x128xf32> to vector<8x128xbf16>
    %cst_18 = arith.constant dense<0.000000e+00> : vector<8x256xf32>
    %45 = tpu.matmul %44, %9, %cst_18 {dimension_numbers = #tpu.dot_dimension_numbers<[1], [0], [0], [1], [0, 0, 1, 1], [], []>} : vector<8x128xbf16>, vector<128x256xbf16>, vector<8x256xf32> -> vector<8x256xf32>
    %46 = vector.extract_strided_slice %45 {offsets = [0, 128], sizes = [8, 128], strides = [1, 1]} : vector<8x256xf32> to vector<8x128xf32>
    %47 = arith.truncf %35 : vector<8x128xf32> to vector<8x128xbf16>
    %cst_19 = arith.constant dense<0.000000e+00> : vector<8x128xf32>
    %48 = tpu.matmul %47, %10, %cst_19 {dimension_numbers = #tpu.dot_dimension_numbers<[1], [0], [0], [1], [0, 0, 1, 1], [], []>} : vector<8x128xbf16>, vector<128x128xbf16>, vector<8x128xf32> -> vector<8x128xf32>
    %49 = arith.addf %46, %48 : vector<8x128xf32>
    %50 = arith.addf %49, %8 : vector<8x128xf32>
    %51 = math.tanh %50 : vector<8x128xf32>
    %c3_i32 = arith.constant 3 : i32
    %52 = arith.index_cast %c3_i32 : i32 to index
    %c0_20 = arith.constant 0 : index
    %c0_21 = arith.constant 0 : index
    %53 = vector.load %arg1[%52, %c0_20, %c0_21] : memref<8x8x128xbf16, #tpu.memory_space<vmem>>, vector<1x8x128xbf16>
    %54 = vector.shape_cast %53 : vector<1x8x128xbf16> to vector<8x128xbf16>
    %55 = arith.extf %54 : vector<8x128xbf16> to vector<8x128xf32>
    %56 = vector.extract_strided_slice %45 {offsets = [0, 0], sizes = [8, 128], strides = [1, 1]} : vector<8x256xf32> to vector<8x128xf32>
    %57 = arith.addf %55, %56 : vector<8x128xf32>
    %58 = arith.addf %57, %2 : vector<8x128xf32>
    %59 = math.tanh %58 : vector<8x128xf32>
    %60 = arith.truncf %59 : vector<8x128xf32> to vector<8x128xbf16>
    %cst_22 = arith.constant dense<0.000000e+00> : vector<8x256xf32>
    %61 = tpu.matmul %60, %9, %cst_22 {dimension_numbers = #tpu.dot_dimension_numbers<[1], [0], [0], [1], [0, 0, 1, 1], [], []>} : vector<8x128xbf16>, vector<128x256xbf16>, vector<8x256xf32> -> vector<8x256xf32>
    %62 = vector.extract_strided_slice %61 {offsets = [0, 128], sizes = [8, 128], strides = [1, 1]} : vector<8x256xf32> to vector<8x128xf32>
    %63 = arith.truncf %51 : vector<8x128xf32> to vector<8x128xbf16>
    %cst_23 = arith.constant dense<0.000000e+00> : vector<8x128xf32>
    %64 = tpu.matmul %63, %10, %cst_23 {dimension_numbers = #tpu.dot_dimension_numbers<[1], [0], [0], [1], [0, 0, 1, 1], [], []>} : vector<8x128xbf16>, vector<128x128xbf16>, vector<8x128xf32> -> vector<8x128xf32>
    %65 = arith.addf %62, %64 : vector<8x128xf32>
    %66 = arith.addf %65, %8 : vector<8x128xf32>
    %67 = math.tanh %66 : vector<8x128xf32>
    %c4_i32 = arith.constant 4 : i32
    %68 = arith.index_cast %c4_i32 : i32 to index
    %c0_24 = arith.constant 0 : index
    %c0_25 = arith.constant 0 : index
    %69 = vector.load %arg1[%68, %c0_24, %c0_25] : memref<8x8x128xbf16, #tpu.memory_space<vmem>>, vector<1x8x128xbf16>
    %70 = vector.shape_cast %69 : vector<1x8x128xbf16> to vector<8x128xbf16>
    %71 = arith.extf %70 : vector<8x128xbf16> to vector<8x128xf32>
    %72 = vector.extract_strided_slice %61 {offsets = [0, 0], sizes = [8, 128], strides = [1, 1]} : vector<8x256xf32> to vector<8x128xf32>
    %73 = arith.addf %71, %72 : vector<8x128xf32>
    %74 = arith.addf %73, %2 : vector<8x128xf32>
    %75 = math.tanh %74 : vector<8x128xf32>
    %76 = arith.truncf %75 : vector<8x128xf32> to vector<8x128xbf16>
    %cst_26 = arith.constant dense<0.000000e+00> : vector<8x256xf32>
    %77 = tpu.matmul %76, %9, %cst_26 {dimension_numbers = #tpu.dot_dimension_numbers<[1], [0], [0], [1], [0, 0, 1, 1], [], []>} : vector<8x128xbf16>, vector<128x256xbf16>, vector<8x256xf32> -> vector<8x256xf32>
    %78 = vector.extract_strided_slice %77 {offsets = [0, 128], sizes = [8, 128], strides = [1, 1]} : vector<8x256xf32> to vector<8x128xf32>
    %79 = arith.truncf %67 : vector<8x128xf32> to vector<8x128xbf16>
    %cst_27 = arith.constant dense<0.000000e+00> : vector<8x128xf32>
    %80 = tpu.matmul %79, %10, %cst_27 {dimension_numbers = #tpu.dot_dimension_numbers<[1], [0], [0], [1], [0, 0, 1, 1], [], []>} : vector<8x128xbf16>, vector<128x128xbf16>, vector<8x128xf32> -> vector<8x128xf32>
    %81 = arith.addf %78, %80 : vector<8x128xf32>
    %82 = arith.addf %81, %8 : vector<8x128xf32>
    %83 = math.tanh %82 : vector<8x128xf32>
    %c5_i32 = arith.constant 5 : i32
    %84 = arith.index_cast %c5_i32 : i32 to index
    %c0_28 = arith.constant 0 : index
    %c0_29 = arith.constant 0 : index
    %85 = vector.load %arg1[%84, %c0_28, %c0_29] : memref<8x8x128xbf16, #tpu.memory_space<vmem>>, vector<1x8x128xbf16>
    %86 = vector.shape_cast %85 : vector<1x8x128xbf16> to vector<8x128xbf16>
    %87 = arith.extf %86 : vector<8x128xbf16> to vector<8x128xf32>
    %88 = vector.extract_strided_slice %77 {offsets = [0, 0], sizes = [8, 128], strides = [1, 1]} : vector<8x256xf32> to vector<8x128xf32>
    %89 = arith.addf %87, %88 : vector<8x128xf32>
    %90 = arith.addf %89, %2 : vector<8x128xf32>
    %91 = math.tanh %90 : vector<8x128xf32>
    %92 = arith.truncf %91 : vector<8x128xf32> to vector<8x128xbf16>
    %cst_30 = arith.constant dense<0.000000e+00> : vector<8x256xf32>
    %93 = tpu.matmul %92, %9, %cst_30 {dimension_numbers = #tpu.dot_dimension_numbers<[1], [0], [0], [1], [0, 0, 1, 1], [], []>} : vector<8x128xbf16>, vector<128x256xbf16>, vector<8x256xf32> -> vector<8x256xf32>
    %94 = vector.extract_strided_slice %93 {offsets = [0, 128], sizes = [8, 128], strides = [1, 1]} : vector<8x256xf32> to vector<8x128xf32>
    %95 = arith.truncf %83 : vector<8x128xf32> to vector<8x128xbf16>
    %cst_31 = arith.constant dense<0.000000e+00> : vector<8x128xf32>
    %96 = tpu.matmul %95, %10, %cst_31 {dimension_numbers = #tpu.dot_dimension_numbers<[1], [0], [0], [1], [0, 0, 1, 1], [], []>} : vector<8x128xbf16>, vector<128x128xbf16>, vector<8x128xf32> -> vector<8x128xf32>
    %97 = arith.addf %94, %96 : vector<8x128xf32>
    %98 = arith.addf %97, %8 : vector<8x128xf32>
    %99 = math.tanh %98 : vector<8x128xf32>
    %c6_i32 = arith.constant 6 : i32
    %100 = arith.index_cast %c6_i32 : i32 to index
    %c0_32 = arith.constant 0 : index
    %c0_33 = arith.constant 0 : index
    %101 = vector.load %arg1[%100, %c0_32, %c0_33] : memref<8x8x128xbf16, #tpu.memory_space<vmem>>, vector<1x8x128xbf16>
    %102 = vector.shape_cast %101 : vector<1x8x128xbf16> to vector<8x128xbf16>
    %103 = arith.extf %102 : vector<8x128xbf16> to vector<8x128xf32>
    %104 = vector.extract_strided_slice %93 {offsets = [0, 0], sizes = [8, 128], strides = [1, 1]} : vector<8x256xf32> to vector<8x128xf32>
    %105 = arith.addf %103, %104 : vector<8x128xf32>
    %106 = arith.addf %105, %2 : vector<8x128xf32>
    %107 = math.tanh %106 : vector<8x128xf32>
    %108 = arith.truncf %107 : vector<8x128xf32> to vector<8x128xbf16>
    %cst_34 = arith.constant dense<0.000000e+00> : vector<8x256xf32>
    %109 = tpu.matmul %108, %9, %cst_34 {dimension_numbers = #tpu.dot_dimension_numbers<[1], [0], [0], [1], [0, 0, 1, 1], [], []>} : vector<8x128xbf16>, vector<128x256xbf16>, vector<8x256xf32> -> vector<8x256xf32>
    %110 = vector.extract_strided_slice %109 {offsets = [0, 128], sizes = [8, 128], strides = [1, 1]} : vector<8x256xf32> to vector<8x128xf32>
    %111 = arith.truncf %99 : vector<8x128xf32> to vector<8x128xbf16>
    %cst_35 = arith.constant dense<0.000000e+00> : vector<8x128xf32>
    %112 = tpu.matmul %111, %10, %cst_35 {dimension_numbers = #tpu.dot_dimension_numbers<[1], [0], [0], [1], [0, 0, 1, 1], [], []>} : vector<8x128xbf16>, vector<128x128xbf16>, vector<8x128xf32> -> vector<8x128xf32>
    %113 = arith.addf %110, %112 : vector<8x128xf32>
    %114 = arith.addf %113, %8 : vector<8x128xf32>
    %115 = math.tanh %114 : vector<8x128xf32>
    %c7_i32 = arith.constant 7 : i32
    %116 = arith.index_cast %c7_i32 : i32 to index
    %c0_36 = arith.constant 0 : index
    %c0_37 = arith.constant 0 : index
    %117 = vector.load %arg1[%116, %c0_36, %c0_37] : memref<8x8x128xbf16, #tpu.memory_space<vmem>>, vector<1x8x128xbf16>
    %118 = vector.shape_cast %117 : vector<1x8x128xbf16> to vector<8x128xbf16>
    %119 = arith.extf %118 : vector<8x128xbf16> to vector<8x128xf32>
    %120 = vector.extract_strided_slice %109 {offsets = [0, 0], sizes = [8, 128], strides = [1, 1]} : vector<8x256xf32> to vector<8x128xf32>
    %121 = arith.addf %119, %120 : vector<8x128xf32>
    %122 = arith.addf %121, %2 : vector<8x128xf32>
    %123 = math.tanh %122 : vector<8x128xf32>
    %124 = arith.truncf %123 : vector<8x128xf32> to vector<8x128xbf16>
    %cst_38 = arith.constant dense<0.000000e+00> : vector<8x256xf32>
    %125 = tpu.matmul %124, %9, %cst_38 {dimension_numbers = #tpu.dot_dimension_numbers<[1], [0], [0], [1], [0, 0, 1, 1], [], []>} : vector<8x128xbf16>, vector<128x256xbf16>, vector<8x256xf32> -> vector<8x256xf32>
    %126 = vector.extract_strided_slice %125 {offsets = [0, 128], sizes = [8, 128], strides = [1, 1]} : vector<8x256xf32> to vector<8x128xf32>
    %127 = arith.truncf %115 : vector<8x128xf32> to vector<8x128xbf16>
    %cst_39 = arith.constant dense<0.000000e+00> : vector<8x128xf32>
    %128 = tpu.matmul %127, %10, %cst_39 {dimension_numbers = #tpu.dot_dimension_numbers<[1], [0], [0], [1], [0, 0, 1, 1], [], []>} : vector<8x128xbf16>, vector<128x128xbf16>, vector<8x128xf32> -> vector<8x128xf32>
    %129 = arith.addf %126, %128 : vector<8x128xf32>
    %130 = arith.addf %129, %8 : vector<8x128xf32>
    %131 = math.tanh %130 : vector<8x128xf32>
    %c7_i32_40 = arith.constant 7 : i32
    %132 = arith.truncf %131 : vector<8x128xf32> to vector<8x128xbf16>
    %c0_41 = arith.constant 0 : index
    %c0_42 = arith.constant 0 : index
    %133 = vector.load %arg4[%c0_41, %c0_42] : memref<128x128xbf16, #tpu.memory_space<vmem>>, vector<128x128xbf16>
    %cst_43 = arith.constant dense<0.000000e+00> : vector<8x128xf32>
    %134 = tpu.matmul %132, %133, %cst_43 {dimension_numbers = #tpu.dot_dimension_numbers<[1], [0], [0], [1], [0, 0, 1, 1], [], []>} : vector<8x128xbf16>, vector<128x128xbf16>, vector<8x128xf32> -> vector<8x128xf32>
    %c0_44 = arith.constant 0 : index
    %c0_45 = arith.constant 0 : index
    %135 = vector.load %arg8[%c0_44, %c0_45] : memref<1x128xf32, #tpu.memory_space<vmem>>, vector<1x128xf32>
    %136 = vector.shape_cast %135 : vector<1x128xf32> to vector<1x128xf32>
    %137 = vector.broadcast %136 : vector<1x128xf32> to vector<8x128xf32>
    %138 = arith.addf %134, %137 : vector<8x128xf32>
    %c0_46 = arith.constant 0 : index
    %c0_47 = arith.constant 0 : index
    %139 = vector.load %arg9[%c0_46, %c0_47] : memref<8x128xf32, #tpu.memory_space<vmem>>, vector<8x128xf32>
    tpu.vector_store %arg9[%c0_46, %c0_47], %138 {strides = array<i32>} : memref<8x128xf32, #tpu.memory_space<vmem>>, vector<8x128xf32>,
    return
  }
  func.func @transform_0(%arg0: i32) -> (i32, i32, i32) {
    %c0_i32 = arith.constant 0 : i32
    %c0_i32_0 = arith.constant 0 : i32
    %c0_i32_1 = arith.constant 0 : i32
    return %c0_i32, %arg0, %c0_i32_0 : i32, i32, i32
  }
  func.func @transform_1(%arg0: i32) -> (i32, i32) {
    %c0_i32 = arith.constant 0 : i32
    %c0_i32_0 = arith.constant 0 : i32
    %c0_i32_1 = arith.constant 0 : i32
    return %c0_i32, %c0_i32_0 : i32, i32
  }
  func.func @transform_2(%arg0: i32) -> (i32, i32) {
    %c0_i32 = arith.constant 0 : i32
    %c0_i32_0 = arith.constant 0 : i32
    %c0_i32_1 = arith.constant 0 : i32
    return %c0_i32, %c0_i32_0 : i32, i32
  }
  func.func @transform_3(%arg0: i32) -> (i32, i32) {
    %c0_i32 = arith.constant 0 : i32
    %c0_i32_0 = arith.constant 0 : i32
    %c0_i32_1 = arith.constant 0 : i32
    return %c0_i32, %c0_i32_0 : i32, i32
  }
  func.func @transform_4(%arg0: i32) -> (i32, i32) {
    %c0_i32 = arith.constant 0 : i32
    %c0_i32_0 = arith.constant 0 : i32
    %c0_i32_1 = arith.constant 0 : i32
    return %c0_i32, %c0_i32_0 : i32, i32
  }
  func.func @transform_5(%arg0: i32) -> (i32, i32) {
    %c0_i32 = arith.constant 0 : i32
    %c0_i32_0 = arith.constant 0 : i32
    %c0_i32_1 = arith.constant 0 : i32
    return %c0_i32, %c0_i32_0 : i32, i32
  }
  func.func @transform_6(%arg0: i32) -> (i32, i32) {
    %c0_i32 = arith.constant 0 : i32
    %c0_i32_0 = arith.constant 0 : i32
    %c0_i32_1 = arith.constant 0 : i32
    return %c0_i32, %c0_i32_0 : i32, i32
  }
  func.func @transform_7(%arg0: i32) -> (i32, i32) {
    %c0_i32 = arith.constant 0 : i32
    %c0_i32_0 = arith.constant 0 : i32
    %c0_i32_1 = arith.constant 0 : i32
    return %c0_i32, %c0_i32_0 : i32, i32
  }
  func.func @transform_8(%arg0: i32) -> (i32, i32) {
    %c0_i32 = arith.constant 0 : i32
    %c0_i32_0 = arith.constant 0 : i32
    return %arg0, %c0_i32 : i32, i32
  }
}

</mosaic_0001>

<bundles_post_ra>
// kernel: tpu_custom_call.1
= control target key start
LH: loop header
LB: loop body
LE: loop exit
PB: predicated region body
PF: predicated region fallthrough
CT: control target
= control target key end

     0   :  { %13 = vsyncpa [#allocation3], 0  ;;  %s1973_s0 = inlined_call_operand.hbm [shape: bf16[8,8,128], index: 0, kind: input, shape index: {}]   ;;  %s1974_s1 = inlined_call_operand.hbm [shape: bf16[128,256], index: 1, kind: input, shape index: {}]   ;;  %s1975_s2 = inlined_call_operand.hbm [shape: bf16[128,128], index: 2, kind: input, shape index: {}]   ;;  %s1976_s3 = inlined_call_operand.hbm [shape: bf16[128,128], index: 3, kind: input, shape index: {}]   ;;  %s1977_s4 = inlined_call_operand.vmem [shape: f32[1,128], index: 4, kind: input, shape index: {}]   ;;  %s1978_s5 = inlined_call_operand.vmem [shape: f32[1,128], index: 5, kind: input, shape index: {}]   ;;  %s1979_s6 = inlined_call_operand.vmem [shape: f32[1,128], index: 6, kind: input, shape index: {}]   ;;  %s1980_s7 = inlined_call_operand.vmem [shape: f32[1,128], index: 7, kind: input, shape index: {}]   ;;  %s1981_s8 = inlined_call_operand.hbm [shape: f32[8,128], index: 8, kind: output, shape index: {}]  }
   0x1   :  { %14 = vsyncpa [#allocation6], 0 }
   0x2   :  { %15 = vsyncpa [#allocation9], 0 }
   0x3   :  { %16 = vsyncpa [#allocation4], 0  ;;  %s1547_s27 = smov [#allocation5]  }
   0x4   :  { %s34_s28 = sshll.u32 %s1547_s27, 4  ;;  %s35_s28 = int_to_ptr.vmem [resolvable:$true] %s34_s28 }
   0x5   :  { %s1447_s29 = scalar_lea.vmem %s35_s28, 2048  ;;  %p1452_p1 = scmp.lt.s32.totalorder %s35_s28, %s35_s28 }
   0x6   :  { %p1448_p0 = scmp.ne.s32.totalorder %s35_s28, %s1447_s29  ;;  %p1453_p2 = scmp.lt.s32.totalorder %s1447_s29, %s1447_s29 }
   0x8   :  { %p1454_p3 = por %p1453_p2, %p1452_p1 }
   0xa   :  { %p1455_p4 = pnand %p1454_p3, %p1448_p0 }
   0xc   :  { %1458 = shalt.err (!%p1455_p4)
}
   0xd   :  { %s1548_s30 = smov 128   ;;  %s1549_s9 = smov 8  }
   0xe   :  { %40 = dma.hbm_to_vmem [thread:$0]  %s1974_s1, 2048, %s35_s28, [#allocation6], %s1548_s30, %s1548_s30, %s1549_s9  }
   0xf   :  { %s1550_s12 = smov [#allocation2]  }
  0x10   :  { %s22_s13 = sshll.u32 %s1550_s12, 4  ;;  %s23_s13 = int_to_ptr.vmem [resolvable:$true] %s22_s13 }
  0x11   :  { %s1467_s14 = scalar_lea.vmem %s23_s13, 512  ;;  %p1472_p6 = scmp.lt.s32.totalorder %s23_s13, %s23_s13 }
  0x12   :  { %p1468_p5 = scmp.ne.s32.totalorder %s23_s13, %s1467_s14  ;;  %p1473_p7 = scmp.lt.s32.totalorder %s1467_s14, %s1467_s14 }
  0x14   :  { %p1474_p8 = por %p1473_p7, %p1472_p6 }
  0x16   :  { %p1475_p9 = pnand %p1474_p8, %p1468_p5 }
  0x18   :  { %1478 = shalt.err (!%p1475_p9)
}
  0x19   :  { %s1551_s15 = smov 64   ;;  %s1552_s16 = smov 4  }
  0x1a   :  { %28 = dma.hbm_to_vmem [thread:$0]  %s1973_s0, 512, %s23_s13, [#allocation3], %s1551_s15, %s1551_s15, %s1552_s16  }
  0x1b   :  { %s1553_s19 = smov [#allocation7]   ;;  %s1554_s21 = smov [#allocation8]  }
  0x1c   :  { %s46_s20 = sshll.u32 %s1553_s19, 4  ;;  %s58_s1 = sshll.u32 %s1554_s21, 4  ;;  %s47_s20 = int_to_ptr.vmem [resolvable:$true] %s46_s20  ;;  %s59_s1 = int_to_ptr.vmem [resolvable:$true] %s58_s1 }
  0x1d   :  { %s1487_s22 = scalar_lea.vmem %s47_s20, 1024  ;;  %p1492_p11 = scmp.lt.s32.totalorder %s47_s20, %s47_s20 }
  0x1e   :  { %p1488_p10 = scmp.ne.s32.totalorder %s47_s20, %s1487_s22  ;;  %p1493_p12 = scmp.lt.s32.totalorder %s1487_s22, %s1487_s22 }
  0x20   :  { %p1494_p13 = por %p1493_p12, %p1492_p11 }
  0x22   :  { %p1495_p0 = pnand %p1494_p13, %p1488_p10 }
  0x24   :  { %1498 = shalt.err (!%p1495_p0)
}
  0x25   :  { %52 = dma.hbm_to_vmem [thread:$0]  %s1975_s2, 1024, %s47_s20, [#allocation6], %s1551_s15, %s1551_s15, %s1552_s16  }
  0x26   :  { %s1507_s25 = scalar_lea.vmem %s59_s1, 1024  ;;  %p1512_p2 = scmp.lt.s32.totalorder %s59_s1, %s59_s1 }
  0x27   :  { %p1508_p1 = scmp.ne.s32.totalorder %s59_s1, %s1507_s25  ;;  %p1513_p3 = scmp.lt.s32.totalorder %s1507_s25, %s1507_s25 }
  0x29   :  { %p1514_p4 = por %p1513_p3, %p1512_p2 }
  0x2b   :  { %p1515_p5 = pnand %p1514_p4, %p1508_p1 }
  0x2d   :  { %1518 = shalt.err (!%p1515_p5)
}
  0x2e   :  { %64 = dma.hbm_to_vmem [thread:$0]  %s1976_s3, 1024, %s59_s1, [#allocation9], %s1551_s15, %s1551_s15, %s1552_s16  }
  0x2f   :  { %1539 = dma.done.wait [#allocation3], 512  }
  0x30   :  { %1540 = vsyncadd [#allocation3], 4294966784 }
  0x31   :  { %1541 = dma.done.wait [#allocation6], 3072  }
  0x32   :  { %1542 = vsyncadd [#allocation6], 4294964224 }
  0x33   :  { %1543 = dma.done.wait [#allocation9], 1024  }
  0x34   :  { %1544 = vsyncadd [#allocation9], 4294966272  ;;  %v1555_v0 = vmov 0   ;;  %v1618_v1 = vld [vmem:[#allocation5 + $0x74] ss:$8 sps:$4 sm:$0xff]   ;;  %v1642_v8 = vld [vmem:[#allocation2] sm:$0xff]  }
  0x35   :  { %255 = vmatprep.mubr.bf16.mxu0 %v1555_v0  ;;  %305 = vmatprep.mubr.bf16.mxu1 %v1555_v0  ;;  %v1620_v2 = vld [vmem:[#allocation5 + $0x70] ss:$8 sps:$4 sm:$0xff]   ;;  %v1623_v3 = vld [vmem:[#allocation5 + $0x64] ss:$8 sps:$4 sm:$0xff]   ;;  %v1627_v4 = vld [vmem:[#allocation5 + $0x60] ss:$8 sps:$4 sm:$0xff]   ;;  %v140_v10 = vunpack.c.l.bf16 %v1642_v8  ;;  %v268_v30 = vunpack.c.h.bf16 %v1642_v8 }
  0x36   :  { %223 = vmatprep.subr.bf16.mxu0 %v1618_v1  ;;  %273 = vmatprep.subr.bf16.mxu1 %v1618_v1  ;;  %v1631_v5 = vld [vmem:[#allocation5 + $0x54] ss:$8 sps:$4 sm:$0xff]   ;;  %v1635_v6 = vld [vmem:[#allocation5 + $0x50] ss:$8 sps:$4 sm:$0xff]   ;;  %v1639_v7 = vld [vmem:[#allocation5 + $0x44] ss:$8 sps:$4 sm:$0xff]  }
  0x37   :  { %224 = vmatpush1.bf16.msra.mxu0 %v1620_v2  ;;  %274 = vmatpush1.bf16.msra.mxu1 %v1620_v2  ;;  %v1645_v9 = vld [vmem:[#allocation5 + $0x40] ss:$8 sps:$4 sm:$0xff]   ;;  %v1650_v11 = vld [vmem:[#allocation5 + $0x34] ss:$8 sps:$4 sm:$0xff]   ;;  %v1653_v12 = vld [vmem:[#allocation5 + $0x30] ss:$8 sps:$4 sm:$0xff]   ;;  %1407 = vtanh.f32 %v140_v10 }
  0x38   :  { %225 = vmatprep.subr.bf16.mxu0 %v1623_v3  ;;  %275 = vmatprep.subr.bf16.mxu1 %v1623_v3  ;;  %v1655_v13 = vld [vmem:[#allocation5 + $0x24] ss:$8 sps:$4 sm:$0xff]   ;;  %v1661_v14 = vld [vmem:[#allocation5 + $0x20] ss:$8 sps:$4 sm:$0xff]   ;;  %v1663_v15 = vld [vmem:[#allocation5 + $0x14] ss:$8 sps:$4 sm:$0xff]  }
  0x39   :  { %v1670_v16 = vld [vmem:[#allocation5 + $0x10] ss:$8 sps:$4 sm:$0xff]   ;;  %v1674_v17 = vld [vmem:[#allocation5 + $0x4] ss:$8 sps:$4 sm:$0xff]   ;;  %v1678_v19 = vld [vmem:[#allocation5] ss:$8 sps:$4 sm:$0xff]  }
  0x3a   :  { %v1684_v21 = vld [vmem:[#allocation7 + $0x38] sm:$0xff]   ;;  %v1556_v22 = vmov 0.0   ;;  %v1690_v23 = vld [vmem:[#allocation7 + $0x30] sm:$0xff]   ;;  %v1694_v24 = vld [vmem:[#allocation7 + $0x28] sm:$0xff]   ;;  %vm1557_vm0 = vmmov 0   ;;  %s1558_s30 = smov [#allocation10]  }
  0x3b   :  { %226 = vmatpush1.bf16.msra.mxu0 %v1627_v4  ;;  %276 = vmatpush1.bf16.msra.mxu1 %v1627_v4  ;;  %v1699_v25 = vld [vmem:[#allocation7 + $0x20] sm:$0xff]   ;;  %v1703_v26 = vld [vmem:[#allocation7 + $0x18] sm:$0xff]   ;;  %v1707_v27 = vld [vmem:[#allocation7 + $0x10] sm:$0xff]   ;;  %s1076_s9 = sshll.u32 %s1558_s30, 4  ;;  %s1077_s9 = int_to_ptr.vmem [resolvable:$true] %s1076_s9 }
  0x3c   :  { %227 = vmatprep.subr.bf16.mxu0 %v1631_v5  ;;  %277 = vmatprep.subr.bf16.mxu1 %v1631_v5  ;;  %v1711_v28 = vld [vmem:[#allocation7 + $0x8] sm:$0xff]   ;;  %v1715_v29 = vld [vmem:[#allocation7] sm:$0xff]   ;;  %s1519_s10 = scalar_lea.vmem %s1077_s9, 128  ;;  %p1524_p7 = scmp.lt.s32.totalorder %s1077_s9, %s1077_s9 }
  0x3d   :  { %v1725_v31 = vld [vmem:[%s1977_s4] ss:$0 sm:$0xff]  ;;  %v407_v44 = vld [vmem:[#allocation2 + $0x8] sm:$0xff]   ;;  %p1520_p6 = scmp.ne.s32.totalorder %s1077_s9, %s1519_s10  ;;  %p1525_p8 = scmp.lt.s32.totalorder %s1519_s10, %s1519_s10 }
  0x3e   :  { %v1088_v33 = vld [vmem:[%s1978_s5] ss:$0 sm:$0xff]  ;;  %v408_v45 = vunpack.c.l.bf16 %v407_v44  ;;  %v500_v63 = vunpack.c.h.bf16 %v407_v44 }
  0x3f   :  { %228 = vmatpush1.bf16.msra.mxu0 %v1635_v6  ;;  %278 = vmatpush1.bf16.msra.mxu1 %v1635_v6  ;;  %v1769_v49 = vld [vmem:[%s1979_s6] ss:$0 sm:$0xff]  ;;  %p1526_p9 = por %p1525_p8, %p1524_p7 }
  0x40   :  { %229 = vmatprep.subr.bf16.mxu0 %v1639_v7  ;;  %279 = vmatprep.subr.bf16.mxu1 %v1639_v7 }
  0x41   :  { %p1527_p10 = pnand %p1526_p9, %p1520_p6 }
  0x43   :  { %230 = vmatpush1.bf16.msra.mxu0 %v1645_v9  ;;  %280 = vmatpush1.bf16.msra.mxu1 %v1645_v9 }
  0x44   :  { %231 = vmatprep.subr.bf16.mxu0 %v1650_v11  ;;  %281 = vmatprep.subr.bf16.mxu1 %v1650_v11  ;;  %v1408_v18 = vpop.eup %1407 }
  0x45   :  { %v142_v20 = vpack.c.bf16 %v1408_v18, %v1408_v18 }
  0x47   :  { %232 = vmatpush1.bf16.msra.mxu0 %v1653_v12  ;;  %282 = vmatpush1.bf16.msra.mxu1 %v1653_v12 }
  0x48   :  { %233 = vmatprep.subr.bf16.mxu0 %v1655_v13  ;;  %283 = vmatprep.subr.bf16.mxu1 %v1655_v13 }
  0x4b   :  { %234 = vmatpush1.bf16.msra.mxu0 %v1661_v14  ;;  %284 = vmatpush1.bf16.msra.mxu1 %v1661_v14 }
  0x4c   :  { %235 = vmatprep.subr.bf16.mxu0 %v1663_v15  ;;  %285 = vmatprep.subr.bf16.mxu1 %v1663_v15 }
  0x4f   :  { %236 = vmatpush1.bf16.msra.mxu0 %v1670_v16  ;;  %286 = vmatpush1.bf16.msra.mxu1 %v1670_v16 }
  0x50   :  { %237 = vmatprep.subr.bf16.mxu0 %v1674_v17  ;;  %287 = vmatprep.subr.bf16.mxu1 %v1674_v17 }
  0x53   :  { %238 = vmatpush1.bf16.msra.mxu0 %v1678_v19  ;;  %288 = vmatpush1.bf16.msra.mxu1 %v1678_v19 }
  0x54   :  { %1195 = vmatprep.subr.bf16.mxu0 %v1556_v22  ;;  %413 = vmatprep.subr.bf16.mxu1 %v1618_v1 }
  0x56   :  { %256 = vmatmul.mubr.bf16.vlgmr.msra.gmra.mxu0 %v142_v20 }
  0x57   :  { %1196 = vmatpush3.bf16.msra.mxu0 %v1684_v21  ;;  %1211 = vmatprep.mubr.msk.bf16.mxu0 %vm1557_vm0, %v1556_v22 }
  0x58   :  { %1197 = vmatprep.subr.bf16.mxu0 %v1556_v22 }
  0x5b   :  { %1198 = vmatpush3.bf16.msra.mxu0 %v1690_v23 }
  0x5c   :  { %1199 = vmatprep.subr.bf16.mxu0 %v1556_v22 }
  0x5f   :  { %1200 = vmatpush3.bf16.msra.mxu0 %v1694_v24 }
  0x60   :  { %1201 = vmatprep.subr.bf16.mxu0 %v1556_v22 }
  0x63   :  { %1202 = vmatpush3.bf16.msra.mxu0 %v1699_v25 }
  0x64   :  { %1203 = vmatprep.subr.bf16.mxu0 %v1556_v22 }
  0x67   :  { %1204 = vmatpush3.bf16.msra.mxu0 %v1703_v26 }
  0x68   :  { %1205 = vmatprep.subr.bf16.mxu0 %v1556_v22 }
  0x6b   :  { %1206 = vmatpush3.bf16.msra.mxu0 %v1707_v27 }
  0x6c   :  { %1207 = vmatprep.subr.bf16.mxu0 %v1556_v22 }
  0x6f   :  { %1208 = vmatpush3.bf16.msra.mxu0 %v1711_v28 }
  0x70   :  { %1209 = vmatprep.subr.bf16.mxu0 %v1556_v22 }
  0x73   :  { %1210 = vmatpush3.bf16.msra.mxu0 %v1715_v29 }
  0x74   :  { %1215 = vmatprep.subr.bf16.mxu0 %v1556_v22 }
 0x116   :  { %v257_v32 = vpop.f32.mrf.mxu0 }
 0x117   :  { %v269_v34 = vadd.f32 %v268_v30, %v257_v32 }
 0x118   :  { %v259_v35 = vpop.f32.mrf.mxu0 }
 0x119   :  { %v270_v36 = vadd.f32 %v1725_v31, %v269_v34  ;;  %v264_v37 = vadd.f32 %v1088_v33, %v259_v35 }
 0x11a   :  { %v261_v38 = vpop.f32.mrf.mxu0 }
 0x11b   :  { %1409 = vtanh.f32 %v270_v36 }
 0x11c   :  { %1411 = vtanh.f32 %v264_v37  ;;  %v262_v39 = vpop.f32.mrf.mxu0 }
 0x128   :  { %v1410_v40 = vpop.eup %1409 }
 0x129   :  { %v1412_v41 = vpop.eup %1411  ;;  %v272_v42 = vpack.c.bf16 %v1410_v40, %v1410_v40 }
 0x12a   :  { %v314_v43 = vpack.c.bf16 %v1412_v41, %v1412_v41 }
 0x12b   :  { %306 = vmatmul.mubr.bf16.vlgmr.msra.gmra.mxu1 %v272_v42 }
 0x12c   :  { %1212 = vmatmul.mubr.bf16.vlgmr.msra.gmra.mxu0 %v314_v43  ;;  %414 = vmatpush1.bf16.msra.mxu1 %v1620_v2  ;;  %v591_v43 = vld [vmem:[#allocation2 + $0x10] sm:$0xff]  }
 0x12d   :  { %1216 = vmatpush3.bf16.msra.mxu0 %v1684_v21  ;;  %415 = vmatprep.subr.bf16.mxu1 %v1623_v3  ;;  %v592_v44 = vunpack.c.l.bf16 %v591_v43 }
 0x12e   :  { %1217 = vmatprep.subr.bf16.mxu0 %v1556_v22  ;;  %445 = vmatprep.mubr.bf16.mxu1 %v1555_v0 }
 0x12f   :  { %1231 = vmatprep.mubr.msk.bf16.mxu0 %vm1557_vm0, %v1556_v22 }
 0x130   :  { %416 = vmatpush1.bf16.msra.mxu1 %v1627_v4 }
 0x131   :  { %1218 = vmatpush3.bf16.msra.mxu0 %v1690_v23  ;;  %417 = vmatprep.subr.bf16.mxu1 %v1631_v5 }
 0x132   :  { %1219 = vmatprep.subr.bf16.mxu0 %v1556_v22 }
 0x134   :  { %418 = vmatpush1.bf16.msra.mxu1 %v1635_v6 }
 0x135   :  { %1220 = vmatpush3.bf16.msra.mxu0 %v1694_v24  ;;  %419 = vmatprep.subr.bf16.mxu1 %v1639_v7 }
 0x136   :  { %1221 = vmatprep.subr.bf16.mxu0 %v1556_v22 }
 0x138   :  { %420 = vmatpush1.bf16.msra.mxu1 %v1645_v9 }
 0x139   :  { %1222 = vmatpush3.bf16.msra.mxu0 %v1699_v25  ;;  %421 = vmatprep.subr.bf16.mxu1 %v1650_v11 }
 0x13a   :  { %1223 = vmatprep.subr.bf16.mxu0 %v1556_v22 }
 0x13c   :  { %422 = vmatpush1.bf16.msra.mxu1 %v1653_v12 }
 0x13d   :  { %1224 = vmatpush3.bf16.msra.mxu0 %v1703_v26  ;;  %423 = vmatprep.subr.bf16.mxu1 %v1655_v13 }
 0x13e   :  { %1225 = vmatprep.subr.bf16.mxu0 %v1556_v22 }
 0x140   :  { %424 = vmatpush1.bf16.msra.mxu1 %v1661_v14 }
 0x141   :  { %1226 = vmatpush3.bf16.msra.mxu0 %v1707_v27  ;;  %425 = vmatprep.subr.bf16.mxu1 %v1663_v15 }
 0x142   :  { %1227 = vmatprep.subr.bf16.mxu0 %v1556_v22 }
 0x144   :  { %426 = vmatpush1.bf16.msra.mxu1 %v1670_v16 }
 0x145   :  { %1228 = vmatpush3.bf16.msra.mxu0 %v1711_v28  ;;  %427 = vmatprep.subr.bf16.mxu1 %v1674_v17 }
 0x146   :  { %1229 = vmatprep.subr.bf16.mxu0 %v1556_v22 }
 0x148   :  { %428 = vmatpush1.bf16.msra.mxu1 %v1678_v19 }
 0x149   :  { %1230 = vmatpush3.bf16.msra.mxu0 %v1715_v29  ;;  %505 = vmatprep.subr.bf16.mxu1 %v1618_v1 }
 0x14a   :  { %1235 = vmatprep.subr.bf16.mxu0 %v1556_v22 }
 0x1eb   :  { %v307_v46 = vpop.f32.mrf.mxu1 }
 0x1ec   :  { %v409_v47 = vadd.f32 %v408_v45, %v307_v46  ;;  %v397_v48 = vpop.f32.mrf.mxu0 }
 0x1ed   :  { %v309_v50 = vpop.f32.mrf.mxu1 }
 0x1ee   :  { %v410_v51 = vadd.f32 %v1725_v31, %v409_v47  ;;  %v403_v52 = vadd.f32 %v397_v48, %v309_v50  ;;  %v1213_v53 = vpop.f32.mrf.mxu0 }
 0x1ef   :  { %v311_v54 = vpop.f32.mrf.mxu1 }
 0x1f0   :  { %1413 = vtanh.f32 %v410_v51  ;;  %v404_v55 = vadd.f32 %v1769_v49, %v403_v52  ;;  %v400_v56 = vpop.f32.mrf.mxu0 }
 0x1f1   :  { %v312_v57 = vpop.f32.mrf.mxu1 }
 0x1f2   :  { %1415 = vtanh.f32 %v404_v55  ;;  %v1214_v58 = vpop.f32.mrf.mxu0 }
 0x1fd   :  { %v1414_v59 = vpop.eup %1413 }
 0x1fe   :  { %v412_v60 = vpack.c.bf16 %v1414_v59, %v1414_v59 }
 0x1ff   :  { %v1416_v61 = vpop.eup %1415 }
 0x200   :  { %v454_v62 = vpack.c.bf16 %v1416_v61, %v1416_v61  ;;  %446 = vmatmul.mubr.bf16.vlgmr.msra.gmra.mxu1 %v412_v60 }
 0x201   :  { %506 = vmatpush1.bf16.msra.mxu1 %v1620_v2  ;;  %537 = vmatprep.mubr.bf16.mxu1 %v1555_v0 }
 0x202   :  { %1232 = vmatmul.mubr.bf16.vlgmr.msra.gmra.mxu0 %v454_v62  ;;  %507 = vmatprep.subr.bf16.mxu1 %v1623_v3  ;;  %v684_v62 = vunpack.c.h.bf16 %v591_v43 }
 0x203   :  { %1236 = vmatpush3.bf16.msra.mxu0 %v1684_v21  ;;  %1251 = vmatprep.mubr.msk.bf16.mxu0 %vm1557_vm0, %v1556_v22 }
 0x204   :  { %1237 = vmatprep.subr.bf16.mxu0 %v1556_v22 }
 0x205   :  { %508 = vmatpush1.bf16.msra.mxu1 %v1627_v4 }
 0x206   :  { %509 = vmatprep.subr.bf16.mxu1 %v1631_v5 }
 0x207   :  { %1238 = vmatpush3.bf16.msra.mxu0 %v1690_v23 }
 0x208   :  { %1239 = vmatprep.subr.bf16.mxu0 %v1556_v22 }
 0x209   :  { %510 = vmatpush1.bf16.msra.mxu1 %v1635_v6 }
 0x20a   :  { %511 = vmatprep.subr.bf16.mxu1 %v1639_v7 }
 0x20b   :  { %1240 = vmatpush3.bf16.msra.mxu0 %v1694_v24 }
 0x20c   :  { %1241 = vmatprep.subr.bf16.mxu0 %v1556_v22 }
 0x20d   :  { %512 = vmatpush1.bf16.msra.mxu1 %v1645_v9 }
 0x20e   :  { %513 = vmatprep.subr.bf16.mxu1 %v1650_v11 }
 0x20f   :  { %1242 = vmatpush3.bf16.msra.mxu0 %v1699_v25 }
 0x210   :  { %1243 = vmatprep.subr.bf16.mxu0 %v1556_v22 }
 0x211   :  { %514 = vmatpush1.bf16.msra.mxu1 %v1653_v12 }
 0x212   :  { %515 = vmatprep.subr.bf16.mxu1 %v1655_v13 }
 0x213   :  { %1244 = vmatpush3.bf16.msra.mxu0 %v1703_v26 }
 0x214   :  { %1245 = vmatprep.subr.bf16.mxu0 %v1556_v22 }
 0x215   :  { %516 = vmatpush1.bf16.msra.mxu1 %v1661_v14 }
 0x216   :  { %517 = vmatprep.subr.bf16.mxu1 %v1663_v15 }
 0x217   :  { %1246 = vmatpush3.bf16.msra.mxu0 %v1707_v27 }
 0x218   :  { %1247 = vmatprep.subr.bf16.mxu0 %v1556_v22 }
 0x219   :  { %518 = vmatpush1.bf16.msra.mxu1 %v1670_v16 }
 0x21a   :  { %519 = vmatprep.subr.bf16.mxu1 %v1674_v17 }
 0x21b   :  { %1248 = vmatpush3.bf16.msra.mxu0 %v1711_v28 }
 0x21c   :  { %1249 = vmatprep.subr.bf16.mxu0 %v1556_v22 }
 0x21d   :  { %520 = vmatpush1.bf16.msra.mxu1 %v1678_v19 }
 0x21e   :  { %597 = vmatprep.subr.bf16.mxu1 %v1618_v1 }
 0x21f   :  { %1250 = vmatpush3.bf16.msra.mxu0 %v1715_v29 }
 0x220   :  { %1255 = vmatprep.subr.bf16.mxu0 %v1556_v22 }
 0x2c0   :  { %v447_v8 = vpop.f32.mrf.mxu1 }
 0x2c1   :  { %v501_v10 = vadd.f32 %v500_v63, %v447_v8 }
 0x2c2   :  { %v449_v18 = vpop.f32.mrf.mxu1  ;;  %v489_v20 = vpop.f32.mrf.mxu0 }
 0x2c3   :  { %v502_v30 = vadd.f32 %v1725_v31, %v501_v10  ;;  %v495_v32 = vadd.f32 %v489_v20, %v449_v18 }
 0x2c4   :  { %v451_v33 = vpop.f32.mrf.mxu1  ;;  %v1233_v34 = vpop.f32.mrf.mxu0 }
 0x2c5   :  { %1417 = vtanh.f32 %v502_v30  ;;  %v496_v35 = vadd.f32 %v1769_v49, %v495_v32 }
 0x2c6   :  { %v452_v36 = vpop.f32.mrf.mxu1  ;;  %v492_v37 = vpop.f32.mrf.mxu0 }
 0x2c7   :  { %1419 = vtanh.f32 %v496_v35 }
 0x2c8   :  { %v1234_v38 = vpop.f32.mrf.mxu0 }
 0x2d2   :  { %v1418_v39 = vpop.eup %1417 }
 0x2d3   :  { %v504_v40 = vpack.c.bf16 %v1418_v39, %v1418_v39 }
 0x2d4   :  { %v1420_v41 = vpop.eup %1419 }
 0x2d5   :  { %v546_v42 = vpack.c.bf16 %v1420_v41, %v1420_v41  ;;  %538 = vmatmul.mubr.bf16.vlgmr.msra.gmra.mxu1 %v504_v40 }
 0x2d6   :  { %598 = vmatpush1.bf16.msra.mxu1 %v1620_v2  ;;  %629 = vmatprep.mubr.bf16.mxu1 %v1555_v0 }
 0x2d7   :  { %1252 = vmatmul.mubr.bf16.vlgmr.msra.gmra.mxu0 %v546_v42  ;;  %599 = vmatprep.subr.bf16.mxu1 %v1623_v3  ;;  %v775_v42 = vld [vmem:[#allocation2 + $0x18] sm:$0xff]  }
 0x2d8   :  { %1256 = vmatpush3.bf16.msra.mxu0 %v1684_v21  ;;  %1271 = vmatprep.mubr.msk.bf16.mxu0 %vm1557_vm0, %v1556_v22  ;;  %v776_v43 = vunpack.c.l.bf16 %v775_v42 }
 0x2d9   :  { %1257 = vmatprep.subr.bf16.mxu0 %v1556_v22 }
 0x2da   :  { %600 = vmatpush1.bf16.msra.mxu1 %v1627_v4 }
 0x2db   :  { %601 = vmatprep.subr.bf16.mxu1 %v1631_v5 }
 0x2dc   :  { %1258 = vmatpush3.bf16.msra.mxu0 %v1690_v23 }
 0x2dd   :  { %1259 = vmatprep.subr.bf16.mxu0 %v1556_v22 }
 0x2de   :  { %602 = vmatpush1.bf16.msra.mxu1 %v1635_v6 }
 0x2df   :  { %603 = vmatprep.subr.bf16.mxu1 %v1639_v7 }
 0x2e0   :  { %1260 = vmatpush3.bf16.msra.mxu0 %v1694_v24 }
 0x2e1   :  { %1261 = vmatprep.subr.bf16.mxu0 %v1556_v22 }
 0x2e2   :  { %604 = vmatpush1.bf16.msra.mxu1 %v1645_v9 }
 0x2e3   :  { %605 = vmatprep.subr.bf16.mxu1 %v1650_v11 }
 0x2e4   :  { %1262 = vmatpush3.bf16.msra.mxu0 %v1699_v25 }
 0x2e5   :  { %1263 = vmatprep.subr.bf16.mxu0 %v1556_v22 }
 0x2e6   :  { %606 = vmatpush1.bf16.msra.mxu1 %v1653_v12 }
 0x2e7   :  { %607 = vmatprep.subr.bf16.mxu1 %v1655_v13 }
 0x2e8   :  { %1264 = vmatpush3.bf16.msra.mxu0 %v1703_v26 }
 0x2e9   :  { %1265 = vmatprep.subr.bf16.mxu0 %v1556_v22 }
 0x2ea   :  { %608 = vmatpush1.bf16.msra.mxu1 %v1661_v14 }
 0x2eb   :  { %609 = vmatprep.subr.bf16.mxu1 %v1663_v15 }
 0x2ec   :  { %1266 = vmatpush3.bf16.msra.mxu0 %v1707_v27 }
 0x2ed   :  { %1267 = vmatprep.subr.bf16.mxu0 %v1556_v22 }
 0x2ee   :  { %610 = vmatpush1.bf16.msra.mxu1 %v1670_v16 }
 0x2ef   :  { %611 = vmatprep.subr.bf16.mxu1 %v1674_v17 }
 0x2f0   :  { %1268 = vmatpush3.bf16.msra.mxu0 %v1711_v28 }
 0x2f1   :  { %1269 = vmatprep.subr.bf16.mxu0 %v1556_v22 }
 0x2f2   :  { %612 = vmatpush1.bf16.msra.mxu1 %v1678_v19 }
 0x2f3   :  { %689 = vmatprep.subr.bf16.mxu1 %v1618_v1 }
 0x2f4   :  { %1270 = vmatpush3.bf16.msra.mxu0 %v1715_v29 }
 0x2f5   :  { %1275 = vmatprep.subr.bf16.mxu0 %v1556_v22 }
 0x395   :  { %v539_v45 = vpop.f32.mrf.mxu1 }
 0x396   :  { %v593_v46 = vadd.f32 %v592_v44, %v539_v45 }
 0x397   :  { %v541_v47 = vpop.f32.mrf.mxu1  ;;  %v581_v48 = vpop.f32.mrf.mxu0 }
 0x398   :  { %v594_v50 = vadd.f32 %v1725_v31, %v593_v46  ;;  %v587_v51 = vadd.f32 %v581_v48, %v541_v47 }
 0x399   :  { %v543_v52 = vpop.f32.mrf.mxu1  ;;  %v1253_v53 = vpop.f32.mrf.mxu0 }
 0x39a   :  { %1421 = vtanh.f32 %v594_v50  ;;  %v588_v54 = vadd.f32 %v1769_v49, %v587_v51 }
 0x39b   :  { %v544_v55 = vpop.f32.mrf.mxu1  ;;  %v584_v56 = vpop.f32.mrf.mxu0 }
 0x39c   :  { %1423 = vtanh.f32 %v588_v54 }
 0x39d   :  { %v1254_v57 = vpop.f32.mrf.mxu0 }
 0x3a7   :  { %v1422_v58 = vpop.eup %1421 }
 0x3a8   :  { %v596_v59 = vpack.c.bf16 %v1422_v58, %v1422_v58 }
 0x3a9   :  { %v1424_v60 = vpop.eup %1423 }
 0x3aa   :  { %v638_v61 = vpack.c.bf16 %v1424_v60, %v1424_v60  ;;  %630 = vmatmul.mubr.bf16.vlgmr.msra.gmra.mxu1 %v596_v59 }
 0x3ab   :  { %690 = vmatpush1.bf16.msra.mxu1 %v1620_v2  ;;  %721 = vmatprep.mubr.bf16.mxu1 %v1555_v0 }
 0x3ac   :  { %1272 = vmatmul.mubr.bf16.vlgmr.msra.gmra.mxu0 %v638_v61  ;;  %691 = vmatprep.subr.bf16.mxu1 %v1623_v3 }
 0x3ad   :  { %1276 = vmatpush3.bf16.msra.mxu0 %v1684_v21  ;;  %1291 = vmatprep.mubr.msk.bf16.mxu0 %vm1557_vm0, %v1556_v22 }
 0x3ae   :  { %1277 = vmatprep.subr.bf16.mxu0 %v1556_v22 }
 0x3af   :  { %692 = vmatpush1.bf16.msra.mxu1 %v1627_v4 }
 0x3b0   :  { %693 = vmatprep.subr.bf16.mxu1 %v1631_v5 }
 0x3b1   :  { %1278 = vmatpush3.bf16.msra.mxu0 %v1690_v23 }
 0x3b2   :  { %1279 = vmatprep.subr.bf16.mxu0 %v1556_v22 }
 0x3b3   :  { %694 = vmatpush1.bf16.msra.mxu1 %v1635_v6 }
 0x3b4   :  { %695 = vmatprep.subr.bf16.mxu1 %v1639_v7 }
 0x3b5   :  { %1280 = vmatpush3.bf16.msra.mxu0 %v1694_v24 }
 0x3b6   :  { %1281 = vmatprep.subr.bf16.mxu0 %v1556_v22 }
 0x3b7   :  { %696 = vmatpush1.bf16.msra.mxu1 %v1645_v9 }
 0x3b8   :  { %697 = vmatprep.subr.bf16.mxu1 %v1650_v11 }
 0x3b9   :  { %1282 = vmatpush3.bf16.msra.mxu0 %v1699_v25 }
 0x3ba   :  { %1283 = vmatprep.subr.bf16.mxu0 %v1556_v22 }
 0x3bb   :  { %698 = vmatpush1.bf16.msra.mxu1 %v1653_v12 }
 0x3bc   :  { %699 = vmatprep.subr.bf16.mxu1 %v1655_v13 }
 0x3bd   :  { %1284 = vmatpush3.bf16.msra.mxu0 %v1703_v26 }
 0x3be   :  { %1285 = vmatprep.subr.bf16.mxu0 %v1556_v22 }
 0x3bf   :  { %700 = vmatpush1.bf16.msra.mxu1 %v1661_v14 }
 0x3c0   :  { %701 = vmatprep.subr.bf16.mxu1 %v1663_v15 }
 0x3c1   :  { %1286 = vmatpush3.bf16.msra.mxu0 %v1707_v27 }
 0x3c2   :  { %1287 = vmatprep.subr.bf16.mxu0 %v1556_v22 }
 0x3c3   :  { %702 = vmatpush1.bf16.msra.mxu1 %v1670_v16 }
 0x3c4   :  { %703 = vmatprep.subr.bf16.mxu1 %v1674_v17 }
 0x3c5   :  { %1288 = vmatpush3.bf16.msra.mxu0 %v1711_v28 }
 0x3c6   :  { %1289 = vmatprep.subr.bf16.mxu0 %v1556_v22 }
 0x3c7   :  { %704 = vmatpush1.bf16.msra.mxu1 %v1678_v19 }
 0x3c8   :  { %781 = vmatprep.subr.bf16.mxu1 %v1618_v1 }
 0x3c9   :  { %1290 = vmatpush3.bf16.msra.mxu0 %v1715_v29 }
 0x3ca   :  { %1295 = vmatprep.subr.bf16.mxu0 %v1556_v22 }
 0x46a   :  { %v631_v63 = vpop.f32.mrf.mxu1 }
 0x46b   :  { %v685_v8 = vadd.f32 %v684_v62, %v631_v63 }
 0x46c   :  { %v633_v10 = vpop.f32.mrf.mxu1  ;;  %v673_v18 = vpop.f32.mrf.mxu0 }
 0x46d   :  { %v686_v20 = vadd.f32 %v1725_v31, %v685_v8  ;;  %v679_v30 = vadd.f32 %v673_v18, %v633_v10 }
 0x46e   :  { %v635_v32 = vpop.f32.mrf.mxu1  ;;  %v1273_v33 = vpop.f32.mrf.mxu0 }
 0x46f   :  { %1425 = vtanh.f32 %v686_v20  ;;  %v680_v34 = vadd.f32 %v1769_v49, %v679_v30 }
 0x470   :  { %v636_v35 = vpop.f32.mrf.mxu1  ;;  %v676_v36 = vpop.f32.mrf.mxu0 }
 0x471   :  { %1427 = vtanh.f32 %v680_v34 }
 0x472   :  { %v1274_v37 = vpop.f32.mrf.mxu0 }
 0x47c   :  { %v1426_v38 = vpop.eup %1425 }
 0x47d   :  { %v688_v39 = vpack.c.bf16 %v1426_v38, %v1426_v38 }
 0x47e   :  { %v1428_v40 = vpop.eup %1427 }
 0x47f   :  { %v730_v41 = vpack.c.bf16 %v1428_v40, %v1428_v40  ;;  %722 = vmatmul.mubr.bf16.vlgmr.msra.gmra.mxu1 %v688_v39 }
 0x480   :  { %782 = vmatpush1.bf16.msra.mxu1 %v1620_v2  ;;  %813 = vmatprep.mubr.bf16.mxu1 %v1555_v0 }
 0x481   :  { %1292 = vmatmul.mubr.bf16.vlgmr.msra.gmra.mxu0 %v730_v41  ;;  %783 = vmatprep.subr.bf16.mxu1 %v1623_v3 }
 0x482   :  { %1296 = vmatpush3.bf16.msra.mxu0 %v1684_v21  ;;  %1311 = vmatprep.mubr.msk.bf16.mxu0 %vm1557_vm0, %v1556_v22 }
 0x483   :  { %1297 = vmatprep.subr.bf16.mxu0 %v1556_v22 }
 0x484   :  { %784 = vmatpush1.bf16.msra.mxu1 %v1627_v4 }
 0x485   :  { %785 = vmatprep.subr.bf16.mxu1 %v1631_v5 }
 0x486   :  { %1298 = vmatpush3.bf16.msra.mxu0 %v1690_v23 }
 0x487   :  { %1299 = vmatprep.subr.bf16.mxu0 %v1556_v22 }
 0x488   :  { %786 = vmatpush1.bf16.msra.mxu1 %v1635_v6 }
 0x489   :  { %787 = vmatprep.subr.bf16.mxu1 %v1639_v7 }
 0x48a   :  { %1300 = vmatpush3.bf16.msra.mxu0 %v1694_v24 }
 0x48b   :  { %1301 = vmatprep.subr.bf16.mxu0 %v1556_v22 }
 0x48c   :  { %788 = vmatpush1.bf16.msra.mxu1 %v1645_v9 }
 0x48d   :  { %789 = vmatprep.subr.bf16.mxu1 %v1650_v11 }
 0x48e   :  { %1302 = vmatpush3.bf16.msra.mxu0 %v1699_v25 }
 0x48f   :  { %1303 = vmatprep.subr.bf16.mxu0 %v1556_v22 }
 0x490   :  { %790 = vmatpush1.bf16.msra.mxu1 %v1653_v12 }
 0x491   :  { %791 = vmatprep.subr.bf16.mxu1 %v1655_v13 }
 0x492   :  { %1304 = vmatpush3.bf16.msra.mxu0 %v1703_v26 }
 0x493   :  { %1305 = vmatprep.subr.bf16.mxu0 %v1556_v22 }
 0x494   :  { %792 = vmatpush1.bf16.msra.mxu1 %v1661_v14 }
 0x495   :  { %793 = vmatprep.subr.bf16.mxu1 %v1663_v15 }
 0x496   :  { %1306 = vmatpush3.bf16.msra.mxu0 %v1707_v27 }
 0x497   :  { %1307 = vmatprep.subr.bf16.mxu0 %v1556_v22 }
 0x498   :  { %794 = vmatpush1.bf16.msra.mxu1 %v1670_v16 }
 0x499   :  { %795 = vmatprep.subr.bf16.mxu1 %v1674_v17 }
 0x49a   :  { %1308 = vmatpush3.bf16.msra.mxu0 %v1711_v28 }
 0x49b   :  { %1309 = vmatprep.subr.bf16.mxu0 %v1556_v22 }
 0x49c   :  { %796 = vmatpush1.bf16.msra.mxu1 %v1678_v19 }
 0x49d   :  { %873 = vmatprep.subr.bf16.mxu1 %v1618_v1 }
 0x49e   :  { %1310 = vmatpush3.bf16.msra.mxu0 %v1715_v29 }
 0x49f   :  { %1315 = vmatprep.subr.bf16.mxu0 %v1556_v22 }
 0x53f   :  { %v723_v44 = vpop.f32.mrf.mxu1 }
 0x540   :  { %v777_v45 = vadd.f32 %v776_v43, %v723_v44 }
 0x541   :  { %v725_v46 = vpop.f32.mrf.mxu1  ;;  %v765_v47 = vpop.f32.mrf.mxu0 }
 0x542   :  { %v778_v48 = vadd.f32 %v1725_v31, %v777_v45  ;;  %v771_v50 = vadd.f32 %v765_v47, %v725_v46 }
 0x543   :  { %v727_v51 = vpop.f32.mrf.mxu1  ;;  %v1293_v52 = vpop.f32.mrf.mxu0 }
 0x544   :  { %1429 = vtanh.f32 %v778_v48  ;;  %v772_v53 = vadd.f32 %v1769_v49, %v771_v50 }
 0x545   :  { %v728_v54 = vpop.f32.mrf.mxu1  ;;  %v768_v1 = vpop.f32.mrf.mxu0 }
 0x546   :  { %1431 = vtanh.f32 %v772_v53 }
 0x547   :  { %v1294_v55 = vpop.f32.mrf.mxu0 }
 0x551   :  { %v1430_v56 = vpop.eup %1429 }
 0x552   :  { %v780_v57 = vpack.c.bf16 %v1430_v56, %v1430_v56 }
 0x553   :  { %v1432_v58 = vpop.eup %1431 }
 0x554   :  { %v822_v59 = vpack.c.bf16 %v1432_v58, %v1432_v58  ;;  %814 = vmatmul.mubr.bf16.vlgmr.msra.gmra.mxu1 %v780_v57 }
 0x555   :  { %874 = vmatpush1.bf16.msra.mxu1 %v1620_v2  ;;  %905 = vmatprep.mubr.bf16.mxu1 %v1555_v0  ;;  %v868_v0 = vunpack.c.h.bf16 %v775_v42 }
 0x556   :  { %1312 = vmatmul.mubr.bf16.vlgmr.msra.gmra.mxu0 %v822_v59  ;;  %875 = vmatprep.subr.bf16.mxu1 %v1623_v3 }
 0x557   :  { %1316 = vmatpush3.bf16.msra.mxu0 %v1684_v21  ;;  %1331 = vmatprep.mubr.msk.bf16.mxu0 %vm1557_vm0, %v1556_v22 }
 0x558   :  { %1317 = vmatprep.subr.bf16.mxu0 %v1556_v22 }
 0x559   :  { %876 = vmatpush1.bf16.msra.mxu1 %v1627_v4 }
 0x55a   :  { %877 = vmatprep.subr.bf16.mxu1 %v1631_v5 }
 0x55b   :  { %1318 = vmatpush3.bf16.msra.mxu0 %v1690_v23 }
 0x55c   :  { %1319 = vmatprep.subr.bf16.mxu0 %v1556_v22 }
 0x55d   :  { %878 = vmatpush1.bf16.msra.mxu1 %v1635_v6 }
 0x55e   :  { %879 = vmatprep.subr.bf16.mxu1 %v1639_v7 }
 0x55f   :  { %1320 = vmatpush3.bf16.msra.mxu0 %v1694_v24  ;;  %v1400_v24 = vld [vmem:[#allocation8 + $0x30] sm:$0xff]  }
 0x560   :  { %1321 = vmatprep.subr.bf16.mxu0 %v1556_v22 }
 0x561   :  { %880 = vmatpush1.bf16.msra.mxu1 %v1645_v9 }
 0x562   :  { %881 = vmatprep.subr.bf16.mxu1 %v1650_v11 }
 0x563   :  { %1322 = vmatpush3.bf16.msra.mxu0 %v1699_v25  ;;  %v1401_v25 = vld [vmem:[#allocation8 + $0x28] sm:$0xff]  }
 0x564   :  { %1323 = vmatprep.subr.bf16.mxu0 %v1556_v22 }
 0x565   :  { %882 = vmatpush1.bf16.msra.mxu1 %v1653_v12 }
 0x566   :  { %883 = vmatprep.subr.bf16.mxu1 %v1655_v13 }
 0x567   :  { %1324 = vmatpush3.bf16.msra.mxu0 %v1703_v26  ;;  %v1402_v26 = vld [vmem:[#allocation8 + $0x20] sm:$0xff]  }
 0x568   :  { %1325 = vmatprep.subr.bf16.mxu0 %v1556_v22 }
 0x569   :  { %884 = vmatpush1.bf16.msra.mxu1 %v1661_v14 }
 0x56a   :  { %885 = vmatprep.subr.bf16.mxu1 %v1663_v15 }
 0x56b   :  { %1326 = vmatpush3.bf16.msra.mxu0 %v1707_v27  ;;  %v1403_v27 = vld [vmem:[#allocation8 + $0x18] sm:$0xff]  }
 0x56c   :  { %1327 = vmatprep.subr.bf16.mxu0 %v1556_v22 }
 0x56d   :  { %886 = vmatpush1.bf16.msra.mxu1 %v1670_v16 }
 0x56e   :  { %887 = vmatprep.subr.bf16.mxu1 %v1674_v17  ;;  %v1399_v17 = vld [vmem:[#allocation8 + $0x38] sm:$0xff]  }
 0x56f   :  { %1328 = vmatpush3.bf16.msra.mxu0 %v1711_v28  ;;  %v1404_v28 = vld [vmem:[#allocation8 + $0x10] sm:$0xff]  }
 0x570   :  { %1329 = vmatprep.subr.bf16.mxu0 %v1556_v22 }
 0x571   :  { %888 = vmatpush1.bf16.msra.mxu1 %v1678_v19 }
 0x572   :  { %1335 = vmatprep.subr.bf16.mxu1 %v1556_v22 }
 0x573   :  { %1330 = vmatpush3.bf16.msra.mxu0 %v1715_v29  ;;  %v1405_v29 = vld [vmem:[#allocation8 + $0x8] sm:$0xff]  }
 0x614   :  { %v815_v2 = vpop.f32.mrf.mxu1 }
 0x615   :  { %v869_v3 = vadd.f32 %v868_v0, %v815_v2 }
 0x616   :  { %v817_v4 = vpop.f32.mrf.mxu1  ;;  %v857_v5 = vpop.f32.mrf.mxu0 }
 0x617   :  { %v870_v6 = vadd.f32 %v1725_v31, %v869_v3  ;;  %v863_v7 = vadd.f32 %v857_v5, %v817_v4  ;;  %v1406_v31 = vld [vmem:[#allocation8] sm:$0xff]  }
 0x618   :  { %v819_v9 = vpop.f32.mrf.mxu1  ;;  %v1313_v11 = vpop.f32.mrf.mxu0 }
 0x619   :  { %1433 = vtanh.f32 %v870_v6  ;;  %v864_v12 = vadd.f32 %v1769_v49, %v863_v7 }
 0x61a   :  { %v820_v13 = vpop.f32.mrf.mxu1  ;;  %v860_v14 = vpop.f32.mrf.mxu0 }
 0x61b   :  { %1435 = vtanh.f32 %v864_v12 }
 0x61c   :  { %v1314_v15 = vpop.f32.mrf.mxu0 }
 0x626   :  { %v1434_v16 = vpop.eup %1433 }
 0x627   :  { %v872_v19 = vpack.c.bf16 %v1434_v16, %v1434_v16 }
 0x628   :  { %v1436_v21 = vpop.eup %1435 }
 0x629   :  { %v913_v23 = vpack.c.bf16 %v1436_v21, %v1436_v21  ;;  %906 = vmatmul.mubr.bf16.vlgmr.msra.gmra.mxu1 %v872_v19 }
 0x62a   :  { %1336 = vmatpush3.bf16.msra.mxu1 %v1399_v17  ;;  %1351 = vmatprep.mubr.msk.bf16.mxu1 %vm1557_vm0, %v1556_v22 }
 0x62b   :  { %1332 = vmatmul.mubr.bf16.vlgmr.msra.gmra.mxu0 %v913_v23  ;;  %1337 = vmatprep.subr.bf16.mxu1 %v1556_v22 }
 0x62e   :  { %1338 = vmatpush3.bf16.msra.mxu1 %v1400_v24 }
 0x62f   :  { %1339 = vmatprep.subr.bf16.mxu1 %v1556_v22 }
 0x632   :  { %1340 = vmatpush3.bf16.msra.mxu1 %v1401_v25 }
 0x633   :  { %1341 = vmatprep.subr.bf16.mxu1 %v1556_v22 }
 0x636   :  { %1342 = vmatpush3.bf16.msra.mxu1 %v1402_v26 }
 0x637   :  { %1343 = vmatprep.subr.bf16.mxu1 %v1556_v22 }
 0x63a   :  { %1344 = vmatpush3.bf16.msra.mxu1 %v1403_v27 }
 0x63b   :  { %1345 = vmatprep.subr.bf16.mxu1 %v1556_v22 }
 0x63e   :  { %1346 = vmatpush3.bf16.msra.mxu1 %v1404_v28 }
 0x63f   :  { %1347 = vmatprep.subr.bf16.mxu1 %v1556_v22 }
 0x642   :  { %1348 = vmatpush3.bf16.msra.mxu1 %v1405_v29 }
 0x643   :  { %1349 = vmatprep.subr.bf16.mxu1 %v1556_v22  ;;  %v1114_v22 = vld [vmem:[%s1980_s7] ss:$0 sm:$0xff] }
 0x646   :  { %1350 = vmatpush3.bf16.msra.mxu1 %v1406_v31 }
 0x6e9   :  { %v907_v60 = vpop.f32.mrf.mxu1 }
 0x6eb   :  { %v908_v61 = vpop.f32.mrf.mxu1  ;;  %v948_v62 = vpop.f32.mrf.mxu0 }
 0x6ec   :  { %v954_v63 = vadd.f32 %v948_v62, %v908_v61 }
 0x6ed   :  { %v910_v8 = vpop.f32.mrf.mxu1  ;;  %v1333_v10 = vpop.f32.mrf.mxu0 }
 0x6ee   :  { %v955_v18 = vadd.f32 %v1769_v49, %v954_v63 }
 0x6ef   :  { %v911_v20 = vpop.f32.mrf.mxu1  ;;  %v951_v30 = vpop.f32.mrf.mxu0 }
 0x6f0   :  { %1437 = vtanh.f32 %v955_v18 }
 0x6f1   :  { %v1334_v32 = vpop.f32.mrf.mxu0 }
 0x6fd   :  { %v1438_v33 = vpop.eup %1437 }
 0x6fe   :  { %v957_v34 = vpack.c.bf16 %v1438_v33, %v1438_v33 }
 0x700   :  { %1352 = vmatmul.mubr.bf16.vlgmr.msra.gmra.mxu1 %v957_v34 }
 0x7c0   :  { %v1063_v35 = vpop.f32.mrf.mxu1 }
 0x7c1   :  { %v1064_v36 = vadd.f32 %v1114_v22, %v1063_v35 }
 0x7c2   :  { %v1353_v37 = vpop.f32.mrf.mxu1 }
 0x7c3   :  { %1069 = vst [vmem:[#allocation10] sm:$0xff] %v1064_v36 }
 0x7c4   :  { %v1066_v38 = vpop.f32.mrf.mxu1 }
 0x7c5   :  { %1530 = shalt.err (!%p1527_p10)
}
 0x7c6   :  { %1079 = dma.vmem_to_hbm [thread:$0]  %s1077_s9, 128, %s1981_s8, [#allocation4]   ;;  %v1354_v49 = vpop.f32.mrf.mxu1 }
 0x7c7   :  { %1545 = dma.done.wait [#allocation4], 128  }
 0x7c8   :  { %1546 = vsyncadd [#allocation4], 4294967168 }
 0x7c9   :  { %1083 = vsyncpa [#allocation3], 1 }
 0x7ca   :  { %1084 = vsyncpa [#allocation6], 1 }
 0x7cb   :  { %1085 = vsyncpa [#allocation9], 1 }
 0x7cc   :  { %1086 = vsyncpa [#allocation4], 1 }

</bundles_post_ra>
